<compile_context>
chip_gen: v7x
topology: tpu7x:2x2x1
jax: 0.10.0
libtpu: 0.0.40
codegen_flags: <defaults>
</compile_context>

<pallas_src>
import functools

import jax
import jax.numpy as jnp
import numpy as np
from jax import lax
from jax.experimental import pallas as pl
from jax.experimental.pallas import tpu as pltpu


# ----------------------------------------------------------------------------
# Kernel: grid = (row tiles, D chunks).  MSE accumulated over D chunks in a
# VMEM scratch; KL + ELBO finalized and stored on the last D chunk.
# ----------------------------------------------------------------------------
def _vi_tile_kernel(beta_ref, x_ref, xhat_ref, mu_ref, logsig_ref,
                    out_ref, acc_ref, *,
                    n_rows, d_cols, need_row_mask, need_col_mask):
    i = pl.program_id(0)          # row-tile index
    j = pl.program_id(1)          # D-chunk index (reduction axis, "arbitrary")
    tn, td = x_ref.shape

    @pl.when(j == 0)
    def _init():
        acc_ref[...] = jnp.zeros_like(acc_ref)

    # --- reconstruction term (partial sum over this D chunk) ----------------
    # Upcast in-register; inputs may arrive as bf16 to halve HBM bytes.
    x = x_ref[...].astype(jnp.float32)            # (tn, td)
    x_hat = xhat_ref[...].astype(jnp.float32)     # (tn, td)
    diff = x_hat - x
    if need_row_mask or need_col_mask:
        # Ragged last tiles read unspecified data; zero it before squaring.
        mask = None
        if need_row_mask:
            row = i * tn + lax.broadcasted_iota(jnp.int32, (tn, td), 0)
            mask = row < n_rows
        if need_col_mask:
            col = j * td + lax.broadcasted_iota(jnp.int32, (tn, td), 1)
            cmask = col < d_cols
            mask = cmask if mask is None else jnp.logical_and(mask, cmask)
        diff = jnp.where(mask, diff, 0.0)
    acc_ref[...] += jnp.sum(diff * diff, axis=1, keepdims=True)   # (tn, 1)

    # --- finalize on the last D chunk ---------------------------------------
    @pl.when(j == pl.num_programs(1) - 1)
    def _finalize():
        # KL term (algebraically identical to the PyTorch chain):
        #   log(sigma^2) = 2*log_sigma ;  sigma^2 = exp(2*log_sigma)
        mu = mu_ref[...].astype(jnp.float32)                      # (tn, L)
        two_ls = 2.0 * logsig_ref[...].astype(jnp.float32)        # (tn, L)
        if need_row_mask:
            rvalid = (i * tn
                      + lax.broadcasted_iota(jnp.int32, (tn, 1), 0)) < n_rows
            mu = jnp.where(rvalid, mu, 0.0)
            two_ls = jnp.where(rvalid, two_ls, 0.0)               # exp(0)=1 -> kl term 0
        kl_terms = 0.5 * (1.0 + two_ls - mu * mu - jnp.exp(two_ls))
        kl = -jnp.sum(kl_terms, axis=1, keepdims=True)            # (tn, 1)

        mse = acc_ref[...]                                        # (tn, 1)
        beta = beta_ref[0]                                        # runtime SMEM scalar
        elbo = -mse - beta * kl

        # Single merged (tn, 3) output block: [elbo | mse | kl].
        out_ref[:, 0:1] = elbo
        out_ref[:, 1:2] = mse
        out_ref[:, 2:3] = kl


# ----------------------------------------------------------------------------
# VMEM budget / tile selection (generation-aware).
# ----------------------------------------------------------------------------
def _vmem_budget():
    try:
        info = pltpu.get_tpu_info()
        vmem_cap = int(getattr(info, "vmem_capacity_bytes", 64 * 1024 * 1024))
    except Exception:
        vmem_cap = 64 * 1024 * 1024                    # conservative (v7x)
    # 64 MiB scoped limit on 128 MiB parts (v5e/v6e), 48 MiB on 64 MiB (v7x).
    vmem_limit = min(64 * 1024 * 1024, (vmem_cap * 3) // 4)
    # Budget for the accounted footprint (double-buffered inputs + f32 temps),
    # leaving headroom for compiler scratch.
    block_budget = max(4 * 1024 * 1024, vmem_limit // 2 - 2 * 1024 * 1024)
    return vmem_limit, block_budget


def _choose_tiles(N, D, L, x_itemsize, lat_itemsize, budget_bytes):
    # Per x/x_hat element resident in VMEM:
    #   2 arrays * 2 pipeline buffers in HBM dtype  +  ~3 live f32 temporaries.
    per_elem = 4 * x_itemsize + 12
    per_row_extra = L * (4 * lat_itemsize + 12) + 128      # mu/log_sigma + acc/out
    rows_full_d = budget_bytes // (D * per_elem + per_row_extra)
    if rows_full_d >= min(8, N):
        # Whole D fits as one chunk: maximize the row tile inside the budget.
        td = D
        tn = int(min(rows_full_d, N))
        if tn < N:
            tn = (tn // 128) * 128 if tn >= 256 else max(8, (tn // 8) * 8)
    else:
        # D too large for even 8 rows: chunk D (lane-aligned), keep 8 rows.
        tn = N if N < 8 else 8
        avail = budget_bytes - tn * per_row_extra
        td = (avail // (tn * per_elem) // 128) * 128
        td = int(max(128, min(td, D)))
    return int(tn), int(td)


# ----------------------------------------------------------------------------
# Wrapper: tiling, pallas_call, finalize scalar loss outside the kernel.
# ----------------------------------------------------------------------------
def vi_loss_pallas(x, x_hat, qz_mu, qz_log_sigma, beta=1.0, *,
                   row_block=None, d_block=None):
    """x, x_hat: (N, C, H, W); qz_mu, qz_log_sigma: (N, L). Any float dtype."""
    N = int(x.shape[0])
    D = int(np.prod(x.shape[1:]))

    # Reshapes of contiguous arrays are free (no extra HBM pass).
    x_flat = x.reshape(N, D)
    xhat_flat = x_hat.reshape(N, D)
    mu = qz_mu.reshape(N, -1)
    log_sigma = qz_log_sigma.reshape(N, -1)
    L = int(mu.shape[1])

    x_itemsize = max(jnp.dtype(x_flat.dtype).itemsize,
                     jnp.dtype(xhat_flat.dtype).itemsize)
    lat_itemsize = max(jnp.dtype(mu.dtype).itemsize,
                       jnp.dtype(log_sigma.dtype).itemsize)

    vmem_limit, budget = _vmem_budget()
    tn, td = _choose_tiles(N, D, L, x_itemsize, lat_itemsize, budget)
    if row_block is not None:                 # test / tuning override
        tn = int(min(row_block, N))
        assert tn == N or tn % 8 == 0, "row_block must be N or a multiple of 8"
    if d_block is not None:
        td = int(min(d_block, D))
        assert td == D or td % 128 == 0, "d_block must be D or a multiple of 128"

    n_blocks = int(pl.cdiv(N, tn))
    d_blocks = int(pl.cdiv(D, td))
    need_row_mask = (n_blocks * tn) != N      # ragged last row tile
    need_col_mask = (d_blocks * td) != D      # ragged last D chunk

    kernel = functools.partial(
        _vi_tile_kernel, n_rows=N, d_cols=D,
        need_row_mask=need_row_mask, need_col_mask=need_col_mask)

    cost = pl.CostEstimate(
        flops=int(3 * N * D + 8 * N * L),
        transcendentals=int(N * L),
        bytes_accessed=int(
            x_flat.size * jnp.dtype(x_flat.dtype).itemsize
            + xhat_flat.size * jnp.dtype(xhat_flat.dtype).itemsize
            + mu.size * jnp.dtype(mu.dtype).itemsize
            + log_sigma.size * jnp.dtype(log_sigma.dtype).itemsize
            + N * 3 * 4))

    # beta as a runtime SMEM scalar -> no recompile when beta is annealed.
    beta_arr = jnp.asarray(beta, jnp.float32).reshape(1)

    out = pl.pallas_call(
        kernel,
        out_shape=jax.ShapeDtypeStruct((N, 3), jnp.float32),
        grid=(n_blocks, d_blocks),
        in_specs=[
            pl.BlockSpec(memory_space=pltpu.MemorySpace.SMEM),     # beta
            pl.BlockSpec((tn, td), lambda i, j: (i, j)),           # x
            pl.BlockSpec((tn, td), lambda i, j: (i, j)),           # x_hat
            pl.BlockSpec((tn, L), lambda i, j: (i, 0)),            # qz_mu
            pl.BlockSpec((tn, L), lambda i, j: (i, 0)),            # qz_log_sigma
        ],
        out_specs=pl.BlockSpec((tn, 3), lambda i, j: (i, 0)),      # [elbo|mse|kl]
        scratch_shapes=[pltpu.VMEM((tn, 1), jnp.float32)],         # mse accumulator
        compiler_params=pltpu.CompilerParams(
            dimension_semantics=("parallel", "arbitrary"),         # megacore on rows
            vmem_limit_bytes=int(vmem_limit)),
        cost_estimate=cost,
    )(beta_arr, x_flat, xhat_flat, mu, log_sigma)

    elbo = out[:, 0]
    mse = out[:, 1]
    kl = out[:, 2]
    # Tiny scalar reduction finalized outside the mem-bound kernel so the
    # batch grid axis stays purely parallel.
    loss = -jnp.mean(elbo)
    return loss, {"elbo": elbo, "mse_loss": mse, "kl": kl}


# ----------------------------------------------------------------------------
# Synthetic deterministic "model": linear encoder/decoder, deterministic
# latent (z = mu), mirroring the "_nonvar" (no sampling) flavor.  out_dtype
# lets the producer emit bf16 directly (the preferred way to halve HBM bytes).
# ----------------------------------------------------------------------------
def make_synthetic_model(key, C, H, W, latent, out_dtype=jnp.float32):
    D = C * H * W
    k1, k2, k3 = jax.random.split(key, 3)
    W_mu = jax.random.normal(k1, (D, latent), jnp.float32) * 0.02
    W_ls = jax.random.normal(k2, (D, latent), jnp.float32) * 0.02
    W_dec = jax.random.normal(k3, (latent, D), jnp.float32) * 0.02

    def model(x):  # x: (N, C, H, W)
        N = x.shape[0]
        x_flat = x.reshape(N, D).astype(jnp.float32)
        qz_mu = (x_flat @ W_mu).astype(out_dtype)
        qz_log_sigma = (x_flat @ W_ls).astype(out_dtype)
        z = qz_mu                                   # non-variational: z = mu
        x_hat = (z.astype(jnp.float32) @ W_dec).astype(out_dtype).reshape(N, C, H, W)
        return {"x_hat": x_hat, "qz_log_sigma": qz_log_sigma,
                "qz_mu": qz_mu, "z": z}

    return model


def variational_inference_nonvar(model, x, beta=1.0, **tile_kwargs):
    """Mirror of VariationalInference_nonvar.forward(model, x)."""
    outputs = model(x)
    loss, diagnostics = vi_loss_pallas(
        x, outputs["x_hat"], outputs["qz_mu"], outputs["qz_log_sigma"], beta,
        **tile_kwargs)
    return loss, diagnostics, outputs


# ----------------------------------------------------------------------------
# Pure-JAX reference (literal transcription of the PyTorch chain, computed in
# f32 after upcasting, matching the kernel's in-register upcast semantics).
# ----------------------------------------------------------------------------
def _reference(x, x_hat, qz_mu, qz_log_sigma, beta):
    x = x.astype(jnp.float32)
    x_hat = x_hat.astype(jnp.float32)
    mu = qz_mu.astype(jnp.float32)
    sigma = jnp.exp(qz_log_sigma.astype(jnp.float32))
    mse = jnp.sum((x_hat - x) ** 2, axis=tuple(range(1, x.ndim)))
    kl = -jnp.sum(0.5 * (1 + jnp.log(sigma ** 2) - mu ** 2 - sigma ** 2), axis=1)
    elbo = -mse - beta * kl
    return -jnp.mean(elbo), elbo, mse, kl


def _check(loss, diag, x, outputs, beta):
    loss = jax.block_until_ready(loss)
    ref_loss, ref_elbo, ref_mse, ref_kl = _reference(
        x, outputs["x_hat"], outputs["qz_mu"], outputs["qz_log_sigma"], beta)
    np.testing.assert_allclose(np.asarray(loss), np.asarray(ref_loss),
                               rtol=1e-5, atol=1e-4)
    np.testing.assert_allclose(np.asarray(diag["elbo"]), np.asarray(ref_elbo),
                               rtol=1e-5, atol=1e-4)
    np.testing.assert_allclose(np.asarray(diag["mse_loss"]), np.asarray(ref_mse),
                               rtol=1e-5, atol=1e-4)
    np.testing.assert_allclose(np.asarray(diag["kl"]), np.asarray(ref_kl),
                               rtol=1e-5, atol=1e-4)


if __name__ == "__main__":
    C, H, W, LATENT = 4, 16, 16, 32
    beta = 1.0

    key = jax.random.PRNGKey(0)
    kx1, kx2, kmodel = jax.random.split(key, 3)
    model_f32 = make_synthetic_model(kmodel, C, H, W, LATENT)

    # 1) Small module-sized input (N=2), f32, auto tiling (single block).
    x1 = jax.random.normal(kx1, (2, C, H, W), jnp.float32)
    loss1, diag1, outs1 = variational_inference_nonvar(model_f32, x1, beta)
    _check(loss1, diag1, x1, outs1, beta)

    # 2) Ragged row tiles + ragged D chunks (exercises masking & accumulation):
    #    N=20 with row_block=8 (3 row tiles, last ragged) and d_block=384
    #    (3 D chunks of 1024, last ragged).
    x2 = jax.random.normal(kx2, (20, C, H, W), jnp.float32)
    outs2 = model_f32(x2)
    loss2, diag2 = vi_loss_pallas(x2, outs2["x_hat"], outs2["qz_mu"],
                                  outs2["qz_log_sigma"], beta,
                                  row_block=8, d_block=384)
    _check(loss2, diag2, x2, outs2, beta)

    # 3) bf16 producers (decoder/encoder emit bf16): kernel upcasts in-register.
    model_bf16 = make_synthetic_model(kmodel, C, H, W, LATENT,
                                      out_dtype=jnp.bfloat16)
    outs3 = model_bf16(x2)
    loss3, diag3 = vi_loss_pallas(x2, outs3["x_hat"], outs3["qz_mu"],
                                  outs3["qz_log_sigma"], beta)
    _check(loss3, diag3, x2, outs3, beta)

    print("KERNEL_OK")
</pallas_src>

<mosaic_0001>
module attributes {stable_mosaic.version = 11 : i64} {
  func.func @_vi_tile_kernel(%arg0: i32, %arg1: i32, %arg2: memref<1xf32, #tpu.memory_space<smem>>, %arg3: memref<2x1024xf32, #tpu.memory_space<vmem>>, %arg4: memref<2x1024xf32, #tpu.memory_space<vmem>>, %arg5: memref<2x32xf32, #tpu.memory_space<vmem>>, %arg6: memref<2x32xf32, #tpu.memory_space<vmem>>, %arg7: memref<2x3xf32, #tpu.memory_space<vmem>>, %arg8: memref<2x1xf32, #tpu.memory_space<vmem>>) attributes {dimension_semantics = [#tpu.dimension_semantics<parallel>, #tpu.dimension_semantics<arbitrary>], iteration_bounds = array<i64: 1, 1>, scalar_prefetch = 0 : i64, scratch_operands = 1 : i64, tpu.core_type = #tpu.core_type<tc>, window_params = [{transform_indices = @transform_0, window_bounds = array<i64: 1>}, {transform_indices = @transform_1, window_bounds = array<i64: 2, 1024>}, {transform_indices = @transform_2, window_bounds = array<i64: 2, 1024>}, {transform_indices = @transform_3, window_bounds = array<i64: 2, 32>}, {transform_indices = @transform_4, window_bounds = array<i64: 2, 32>}, {transform_indices = @transform_5, window_bounds = array<i64: 2, 3>}]} {
    %c0_i32 = arith.constant 0 : i32
    %0 = arith.cmpi eq, %arg1, %c0_i32 : i32
    %1 = arith.extui %0 : i1 to i32
    %c0_i32_0 = arith.constant 0 : i32
    %2 = arith.cmpi ne, %1, %c0_i32_0 : i32
    scf.if %2 {
      %cst_10 = arith.constant 0.000000e+00 : f32
      %15 = vector.broadcast %cst_10 : f32 to vector<2x1xf32>
      %c0_11 = arith.constant 0 : index
      %c0_12 = arith.constant 0 : index
      %16 = vector.load %arg8[%c0_11, %c0_12] : memref<2x1xf32, #tpu.memory_space<vmem>>, vector<2x1xf32>
      tpu.vector_store %arg8[%c0_11, %c0_12], %15 {strides = array<i32>} : memref<2x1xf32, #tpu.memory_space<vmem>>, vector<2x1xf32>,
    } else {
    }
    %c0 = arith.constant 0 : index
    %c0_1 = arith.constant 0 : index
    %3 = vector.load %arg3[%c0, %c0_1] : memref<2x1024xf32, #tpu.memory_space<vmem>>, vector<2x1024xf32>
    %c0_2 = arith.constant 0 : index
    %c0_3 = arith.constant 0 : index
    %4 = vector.load %arg4[%c0_2, %c0_3] : memref<2x1024xf32, #tpu.memory_space<vmem>>, vector<2x1024xf32>
    %5 = arith.subf %4, %3 : vector<2x1024xf32>
    %c0_4 = arith.constant 0 : index
    %c0_5 = arith.constant 0 : index
    %6 = vector.load %arg8[%c0_4, %c0_5] : memref<2x1xf32, #tpu.memory_space<vmem>>, vector<2x1xf32>
    %7 = arith.mulf %5, %5 : vector<2x1024xf32>
    %cst = arith.constant dense<0.000000e+00> : vector<2xf32>
    %8 = vector.multi_reduction <add>, %7, %cst [1] : vector<2x1024xf32> to vector<2xf32>
    %9 = vector.shape_cast %8 : vector<2xf32> to vector<2x1xf32>
    %10 = arith.addf %6, %9 : vector<2x1xf32>
    %c0_6 = arith.constant 0 : index
    %c0_7 = arith.constant 0 : index
    %11 = vector.load %arg8[%c0_6, %c0_7] : memref<2x1xf32, #tpu.memory_space<vmem>>, vector<2x1xf32>
    tpu.vector_store %arg8[%c0_6, %c0_7], %10 {strides = array<i32>} : memref<2x1xf32, #tpu.memory_space<vmem>>, vector<2x1xf32>,
    %c0_i32_8 = arith.constant 0 : i32
    %12 = arith.cmpi eq, %arg1, %c0_i32_8 : i32
    %13 = arith.extui %12 : i1 to i32
    %c0_i32_9 = arith.constant 0 : i32
    %14 = arith.cmpi ne, %13, %c0_i32_9 : i32
    scf.if %14 {
      %c0_10 = arith.constant 0 : index
      %c0_11 = arith.constant 0 : index
      %15 = vector.load %arg5[%c0_10, %c0_11] : memref<2x32xf32, #tpu.memory_space<vmem>>, vector<2x32xf32>
      %c0_12 = arith.constant 0 : index
      %c0_13 = arith.constant 0 : index
      %16 = vector.load %arg6[%c0_12, %c0_13] : memref<2x32xf32, #tpu.memory_space<vmem>>, vector<2x32xf32>
      %cst_14 = arith.constant 2.000000e+00 : f32
      %17 = vector.broadcast %cst_14 : f32 to vector<2x32xf32>
      %18 = arith.mulf %17, %16 : vector<2x32xf32>
      %cst_15 = arith.constant 1.000000e+00 : f32
      %19 = vector.broadcast %cst_15 : f32 to vector<2x32xf32>
      %20 = arith.addf %19, %18 : vector<2x32xf32>
      %21 = arith.mulf %15, %15 : vector<2x32xf32>
      %22 = arith.subf %20, %21 : vector<2x32xf32>
      %23 = math.exp %18 : vector<2x32xf32>
      %24 = arith.subf %22, %23 : vector<2x32xf32>
      %cst_16 = arith.constant 5.000000e-01 : f32
      %25 = vector.broadcast %cst_16 : f32 to vector<2x32xf32>
      %26 = arith.mulf %25, %24 : vector<2x32xf32>
      %cst_17 = arith.constant dense<0.000000e+00> : vector<2xf32>
      %27 = vector.multi_reduction <add>, %26, %cst_17 [1] : vector<2x32xf32> to vector<2xf32>
      %28 = vector.shape_cast %27 : vector<2xf32> to vector<2x1xf32>
      %cst_18 = arith.constant 0.000000e+00 : f32
      %29 = vector.broadcast %cst_18 : f32 to vector<2x1xf32>
      %30 = arith.subf %29, %28 : vector<2x1xf32>
      %c0_19 = arith.constant 0 : index
      %c0_20 = arith.constant 0 : index
      %31 = vector.load %arg8[%c0_19, %c0_20] : memref<2x1xf32, #tpu.memory_space<vmem>>, vector<2x1xf32>
      %c0_21 = arith.constant 0 : index
      %32 = memref.load %arg2[%c0_21] : memref<1xf32, #tpu.memory_space<smem>>
      %cst_22 = arith.constant 0.000000e+00 : f32
      %33 = vector.broadcast %cst_22 : f32 to vector<2x1xf32>
      %34 = arith.subf %33, %31 : vector<2x1xf32>
      %35 = vector.broadcast %32 : f32 to vector<2x1xf32>
      %36 = arith.mulf %35, %30 : vector<2x1xf32>
      %37 = arith.subf %34, %36 : vector<2x1xf32>
      %c0_23 = arith.constant 0 : index
      %c0_24 = arith.constant 0 : index
      %38 = vector.load %arg7[%c0_23, %c0_24] : memref<2x3xf32, #tpu.memory_space<vmem>>, vector<2x1xf32>
      tpu.vector_store %arg7[%c0_23, %c0_24], %37 {strides = array<i32>} : memref<2x3xf32, #tpu.memory_space<vmem>>, vector<2x1xf32>,
      %c0_25 = arith.constant 0 : index
      %c1 = arith.constant 1 : index
      %39 = vector.load %arg7[%c0_25, %c1] : memref<2x3xf32, #tpu.memory_space<vmem>>, vector<2x1xf32>
      tpu.vector_store %arg7[%c0_25, %c1], %31 {strides = array<i32>} : memref<2x3xf32, #tpu.memory_space<vmem>>, vector<2x1xf32>,
      %c0_26 = arith.constant 0 : index
      %c2 = arith.constant 2 : index
      %40 = vector.load %arg7[%c0_26, %c2] : memref<2x3xf32, #tpu.memory_space<vmem>>, vector<2x1xf32>
      tpu.vector_store %arg7[%c0_26, %c2], %30 {strides = array<i32>} : memref<2x3xf32, #tpu.memory_space<vmem>>, vector<2x1xf32>,
    } else {
    }
    return
  }
  func.func @transform_0(%arg0: i32, %arg1: i32) -> i32 {
    %c0_i32 = arith.constant 0 : i32
    %c0_i32_0 = arith.constant 0 : i32
    return %c0_i32 : i32
  }
  func.func @transform_1(%arg0: i32, %arg1: i32) -> (i32, i32) {
    %c0_i32 = arith.constant 0 : i32
    return %arg0, %arg1 : i32, i32
  }
  func.func @transform_2(%arg0: i32, %arg1: i32) -> (i32, i32) {
    %c0_i32 = arith.constant 0 : i32
    return %arg0, %arg1 : i32, i32
  }
  func.func @transform_3(%arg0: i32, %arg1: i32) -> (i32, i32) {
    %c0_i32 = arith.constant 0 : i32
    %c0_i32_0 = arith.constant 0 : i32
    return %arg0, %c0_i32 : i32, i32
  }
  func.func @transform_4(%arg0: i32, %arg1: i32) -> (i32, i32) {
    %c0_i32 = arith.constant 0 : i32
    %c0_i32_0 = arith.constant 0 : i32
    return %arg0, %c0_i32 : i32, i32
  }
  func.func @transform_5(%arg0: i32, %arg1: i32) -> (i32, i32) {
    %c0_i32 = arith.constant 0 : i32
    %c0_i32_0 = arith.constant 0 : i32
    return %arg0, %c0_i32 : i32, i32
  }
}

</mosaic_0001>

<bundles_post_ra>
// kernel: tpu_custom_call.1
= control target key start
LH: loop header
LB: loop body
LE: loop exit
PB: predicated region body
PF: predicated region fallthrough
CT: control target
= control target key end

     0   :  { %11 = vsyncpa [#allocation5], 0  ;;  %s347_s0 = inlined_call_operand.<no memory space> [shape: f32[1], index: 0, kind: input, shape index: {}]   ;;  %s348_s1 = inlined_call_operand.hbm [shape: f32[2,1024], index: 1, kind: input, shape index: {}]   ;;  %s349_s2 = inlined_call_operand.hbm [shape: f32[2,1024], index: 2, kind: input, shape index: {}]   ;;  %s350_s3 = inlined_call_operand.vmem [shape: f32[2,32], index: 3, kind: input, shape index: {}]   ;;  %s351_s4 = inlined_call_operand.vmem [shape: f32[2,32], index: 4, kind: input, shape index: {}]   ;;  %s352_s5 = inlined_call_operand.hbm [shape: f32[2,3], index: 5, kind: output, shape index: {}]  }
   0x1   :  { %12 = vsyncpa [#allocation8], 0 }
   0x2   :  { %13 = vsyncpa [#allocation6], 0  ;;  %s255_s18 = smov [#allocation4]   ;;  %s256_s20 = smov [#allocation7]  }
   0x3   :  { %s22_s19 = sshll.u32 %s255_s18, 4  ;;  %s32_s21 = sshll.u32 %s256_s20, 4  ;;  %s23_s19 = int_to_ptr.vmem [resolvable:$true] %s22_s19  ;;  %s33_s21 = int_to_ptr.vmem [resolvable:$true] %s32_s21 }
   0x4   :  { %s183_s24 = scalar_lea.hbm %s348_s1, 256 }
   0x5   :  { %p184_p0 = scmp.ne.s32.totalorder %s348_s1, %s183_s24  ;;  %p187_p1 = scmp.lt.u32.totalorder %s183_s24, %s348_s1 }
   0x7   :  { %p189_p2 = pnand %p187_p1, %p184_p0 }
   0x9   :  { %192 = shalt.err (!%p189_p2)
}
   0xa   :  { %s193_s29 = scalar_lea.vmem %s23_s19, 256  ;;  %p198_p4 = scmp.lt.s32.totalorder %s23_s19, %s23_s19 }
   0xb   :  { %p194_p3 = scmp.ne.s32.totalorder %s23_s19, %s193_s29  ;;  %p199_p5 = scmp.lt.s32.totalorder %s193_s29, %s193_s29 }
   0xd   :  { %p200_p6 = por %p199_p5, %p198_p4 }
   0xf   :  { %p201_p7 = pnand %p200_p6, %p194_p3 }
  0x11   :  { %204 = shalt.err (!%p201_p7)
}
  0x12   :  { %25 = dma.hbm_to_vmem [thread:$0]  %s348_s1, 256, %s23_s19, [#allocation5]  }
  0x13   :  { %s205_s9 = scalar_lea.hbm %s349_s2, 256 }
  0x14   :  { %p206_p8 = scmp.ne.s32.totalorder %s349_s2, %s205_s9  ;;  %p209_p9 = scmp.lt.u32.totalorder %s205_s9, %s349_s2 }
  0x16   :  { %p211_p10 = pnand %p209_p9, %p206_p8 }
  0x18   :  { %214 = shalt.err (!%p211_p10)
}
  0x19   :  { %s215_s14 = scalar_lea.vmem %s33_s21, 256  ;;  %p220_p12 = scmp.lt.s32.totalorder %s33_s21, %s33_s21 }
  0x1a   :  { %p216_p11 = scmp.ne.s32.totalorder %s33_s21, %s215_s14  ;;  %p221_p13 = scmp.lt.s32.totalorder %s215_s14, %s215_s14 }
  0x1c   :  { %p222_p0 = por %p221_p13, %p220_p12 }
  0x1e   :  { %p223_p1 = pnand %p222_p0, %p216_p11 }
  0x20   :  { %226 = shalt.err (!%p223_p1)
}
  0x21   :  { %35 = dma.hbm_to_vmem [thread:$0]  %s349_s2, 256, %s33_s21, [#allocation8]  }
  0x22   :  { %249 = dma.done.wait [#allocation5], 256  }
  0x23   :  { %250 = vsyncadd [#allocation5], 4294967040 }
  0x24   :  { %251 = dma.done.wait [#allocation8], 256  }
  0x25   :  { %252 = vsyncadd [#allocation8], 4294967040  ;;  %v67_v0 = vlaneseq  ;;  %v257_v1 = vmov 1983009808   ;;  %vm50_vm0 = vcmask 1024   ;;  %v258_v3 = vmov 0.0  }
  0x26   :  { %v65_v2 = vunpack.c.l.s4 %v257_v1  ;;  %51 = vst.msk [vmem:[#allocation2] sm:$0x3] %vm50_vm0, %v258_v3  ;;  %v52_v6 = vld [vmem:[#allocation4] sm:$0xff]  ;;  %v53_v7 = vld [vmem:[#allocation4 + $0x8] sm:$0xff]  ;;  %v54_v8 = vld [vmem:[#allocation7] sm:$0xff]  ;;  %vm105_vm1 = vcmask 1041408   ;;  %v147_v56 = vstv %s347_s0 }
  0x27   :  { %v68_v5 = vshrl.u32 %v67_v0, 7  ;;  %v55_v9 = vld [vmem:[#allocation7 + $0x8] sm:$0xff]  ;;  %v56_v10 = vsub.f32 %v54_v8, %v52_v6  ;;  %vm139_vm2 = vcmask 254976   ;;  %s259_s19 = smov 1   ;;  %s260_s20 = smov [#allocation9]   ;;  %vm155_vm3 = vcmask 9224  }
  0x28   :  { %v66_v4 = vunpack.c.0.s8 %v65_v2  ;;  %v130_v12 = vld [vmem:[%s351_s4] sm:$0x3]  ;;  %v57_v13 = vsub.f32 %v55_v9, %v53_v7  ;;  %s165_s21 = sshll.u32 %s260_s20, 4  ;;  %vm157_vm4 = vcmask 17424   ;;  %s166_s21 = int_to_ptr.vmem [resolvable:$true] %s165_s21 }
  0x29   :  { %v131_v14 = vmul.f32 2.0, %v130_v12  ;;  %v59_v15 = vmul.f32 %v56_v10, %v56_v10  ;;  %v129_v20 = vld [vmem:[%s350_s3] sm:$0x3]  ;;  %s227_s22 = scalar_lea.vmem %s166_s21, 32  ;;  %p232_p3 = scmp.lt.s32.totalorder %s166_s21, %s166_s21 }
  0x2a   :  { %v69_v11 = vsub.s32 %v66_v4, %v68_v5  ;;  %v60_v16 = vmul.f32 %v57_v13, %v57_v13  ;;  %v133_v26 = vmul.f32 %v129_v20, %v129_v20  ;;  %p228_p2 = scmp.ne.s32.totalorder %s166_s21, %s227_s22  ;;  %p233_p4 = scmp.lt.s32.totalorder %s227_s22, %s227_s22 }
  0x2b   :  { %v135_v17 = vmul.f32 1.442695, %v131_v14  ;;  %v63_v18 = vcombine.high %v59_v15, %v59_v15  ;;  %v132_v30 = vadd.f32 1.0, %v131_v14 }
  0x2c   :  { %v70_v19 = vrot.slane %v59_v15, %v69_v11  ;;  %v80_v21 = vcombine.high %v60_v16, %v60_v16  ;;  %v87_v24 = vrot.slane %v60_v16, %v69_v11  ;;  %p234_p5 = por %p233_p4, %p232_p3 }
  0x2d   :  { %181 = vpow2.f32 %v135_v17  ;;  %v77_v22 = vrot.slane %v63_v18, %v69_v11  ;;  %v134_v37 = vsub.f32 %v132_v30, %v133_v26  ;;  %v58_v51 = vld [vmem:[#allocation2] sm:$0x3] }
  0x2e   :  { %v78_v23 = vcombine.high %v70_v19, %v70_v19  ;;  %v106_v25 = vsel %vm105_vm1, %v70_v19, 0.0  ;;  %v94_v32 = vrot.slane %v80_v21, %v69_v11  ;;  %v95_v33 = vcombine.high %v87_v24, %v87_v24  ;;  %p235_p6 = pnand %p234_p5, %p228_p2 }
  0x2f   :  { %v79_v27 = vcombine.high %v77_v22, %v77_v22  ;;  %v109_v29 = vsel %vm105_vm1, %v77_v22, 0.0  ;;  %v113_v36 = vsel %vm105_vm1, %v87_v24, 0.0 }
  0x30   :  { %v107_v28 = vsel %vm105_vm1, %v78_v23, 0.0  ;;  %v96_v39 = vcombine.high %v94_v32, %v94_v32  ;;  %v115_v40 = vsel %vm105_vm1, %v95_v33, 0.0  ;;  %v117_v43 = vsel %vm105_vm1, %v94_v32, 0.0 }
  0x31   :  { %v108_v31 = vadd.f32 %v107_v28, %v106_v25  ;;  %v111_v34 = vsel %vm105_vm1, %v79_v27, 0.0 }
  0x32   :  { %v119_v46 = vsel %vm105_vm1, %v96_v39, 0.0 }
  0x33   :  { %v110_v35 = vadd.f32 %v109_v29, %v108_v31 }
  0x35   :  { %v112_v38 = vadd.f32 %v111_v34, %v110_v35 }
  0x37   :  { %v182_v41 = vpop.eup %181  ;;  %v114_v42 = vadd.f32 %v113_v36, %v112_v38 }
  0x38   :  { %v137_v44 = vsub.f32 %v134_v37, %v182_v41 }
  0x39   :  { %v116_v45 = vadd.f32 %v115_v40, %v114_v42 }
  0x3a   :  { %v138_v48 = vmul.f32 0.5, %v137_v44 }
  0x3b   :  { %v118_v47 = vadd.f32 %v117_v43, %v116_v45 }
  0x3c   :  { %v140_v50 = vsel %vm139_vm2, %v138_v48, 0.0 }
  0x3d   :  { %v120_v49 = vadd.f32 %v119_v46, %v118_v47 }
  0x3f   :  { %121 = vadd.xlane.f32.xlu0 %v120_v49 }
  0x43   :  { %141 = vadd.xlane.f32.xlu0 %v140_v50 }
  0xcc   :  { %v122_v52 = vpop.xlane.xlu0 %121 }
  0xcd   :  { %v123_v53 = vadd.f32 %v122_v52, %v58_v51 }
  0xcf   :  { %125 = vst.msk [vmem:[#allocation2] sm:$0x3] %vm50_vm0, %v123_v53 }
  0xd0   :  { %v142_v54 = vpop.xlane.xlu0 %141 }
  0xd1   :  { %v143_v55 = vsub.f32 0.0, %v142_v54 }
  0xd3   :  { %v148_v57 = vmul.f32 %v147_v56, %v143_v55 }
  0xd6   :  { %v144_v58 = vld [vmem:[#allocation2] sm:$0x3] }
  0xd7   :  { %152 = vrot.lane.b32.xlu1 %v144_v58, %s259_s19  ;;  %v146_v59 = vsub.f32 0.0, %v144_v58 }
  0xd9   :  { %v149_v60 = vsub.f32 %v146_v59, %v148_v57 }
  0xdb   :  { %150 = vst.msk [vmem:[#allocation9] sm:$0x3] %vm50_vm0, %v149_v60 }
 0x149   :  { %v153_v61 = vpop.permute.xlu1 %152 }
 0x14a   :  { %156 = vst.msk [vmem:[#allocation9] sm:$0x3] %vm155_vm3, %v153_v61 }
 0x14b   :  { %158 = vst.msk [vmem:[#allocation9] sm:$0x3] %vm157_vm4, %v143_v55 }
 0x14c   :  { %238 = shalt.err (!%p235_p6)
}
 0x14d   :  { %s239_s24 = scalar_lea.hbm %s352_s5, 32 }
 0x14e   :  { %p240_p7 = scmp.ne.s32.totalorder %s352_s5, %s239_s24  ;;  %p243_p8 = scmp.lt.u32.totalorder %s239_s24, %s352_s5 }
 0x150   :  { %p245_p9 = pnand %p243_p8, %p240_p7 }
 0x152   :  { %248 = shalt.err (!%p245_p9)
}
 0x153   :  { %168 = dma.vmem_to_hbm [thread:$0]  %s166_s21, 32, %s352_s5, [#allocation6]  }
 0x154   :  { %253 = dma.done.wait [#allocation6], 32  }
 0x155   :  { %254 = vsyncadd [#allocation6], 4294967264 }
 0x156   :  { %172 = vsyncpa [#allocation5], 1 }
 0x157   :  { %173 = vsyncpa [#allocation8], 1 }
 0x158   :  { %174 = vsyncpa [#allocation6], 1 }

</bundles_post_ra>
